<compile_context>
chip_gen: v5e
topology: v5e:2x2
jax: 0.10.0
libtpu: 0.0.40
codegen_flags: <defaults>
</compile_context>

<pallas_src>
import jax
import jax.numpy as jnp
from jax.experimental import pallas as pl
from jax.experimental.pallas import tpu as pltpu

# TPU-friendly demo sizes (feature dims multiples of 128 -> lane-dense).
BATCH = 16
INPUT_SIZE = 256
HIDDEN1_SIZE = 128
HIDDEN2_SIZE = 128
HIDDEN3_SIZE = 128
OUTPUT_SIZE = 128

# For real workloads: 256-512 rows per step amortizes the ~0.35 us grid-step
# overhead and fills the MXU M dimension.  Clamped to the batch, so the demo
# runs as one grid step.
DEFAULT_TILE_B = 256


def _sigmoid_f32(h):
    # exp and approximate reciprocal both execute on the EUP slot (free
    # alongside MXU work); avoids spending VALU cycles on a precise divide.
    return pl.reciprocal(1.0 + jnp.exp(-h), approx=True)


def attribute_net3_kernel(x_ref,
                          w1_ref, b1_ref,
                          w2_ref, b2_ref,
                          w3_ref, b3_ref,
                          w4_ref, b4_ref,
                          out_ref):
    # x and weights arrive as bf16; MXU accumulates in f32; all elementwise
    # math (bias add / ReLU / sigmoid) stays in f32.

    # fc1 + ReLU
    h = jnp.dot(x_ref[...], w1_ref[...],
                preferred_element_type=jnp.float32) + b1_ref[...]
    h = jnp.maximum(h, 0.0)

    # fc2 + sigmoid
    h = jnp.dot(h.astype(jnp.bfloat16), w2_ref[...],
                preferred_element_type=jnp.float32) + b2_ref[...]
    h = _sigmoid_f32(h)

    # fc3 + sigmoid
    h = jnp.dot(h.astype(jnp.bfloat16), w3_ref[...],
                preferred_element_type=jnp.float32) + b3_ref[...]
    h = _sigmoid_f32(h)

    # fc4 + sigmoid
    h = jnp.dot(h.astype(jnp.bfloat16), w4_ref[...],
                preferred_element_type=jnp.float32) + b4_ref[...]
    out_ref[...] = _sigmoid_f32(h).astype(out_ref.dtype)


def attribute_network3(x, params, *, tile_b=DEFAULT_TILE_B):
    """Fused 4-layer MLP forward.

    params = ((w1,b1),(w2,b2),(w3,b3),(w4,b4)); weights are
    (in_features, out_features), biases are (1, out_features).
    """
    (w1, b1), (w2, b2), (w3, b3), (w4, b4) = params
    batch, d_in = x.shape
    d_out = w4.shape[1]

    tile_b = min(tile_b, batch)
    grid = (pl.cdiv(batch, tile_b),)

    # bf16 operands for the MXU (f32 accumulation inside the kernel).  Casting
    # at the boundary also halves the HBM->VMEM DMA bytes for x and weights.
    x_bf = x.astype(jnp.bfloat16)
    w1, w2, w3, w4 = (w.astype(jnp.bfloat16) for w in (w1, w2, w3, w4))

    def param_spec(shape):
        # Same block index every grid step (params stay VMEM-resident) and
        # single-buffered: no point double-buffering a grid-invariant operand.
        return pl.BlockSpec(shape, lambda i: (0, 0),
                            pipeline_mode=pl.Buffered(1))

    out = pl.pallas_call(
        attribute_net3_kernel,
        out_shape=jax.ShapeDtypeStruct((batch, d_out), jnp.float32),
        grid_spec=pltpu.PrefetchScalarGridSpec(
            num_scalar_prefetch=0,
            grid=grid,
            in_specs=[
                pl.BlockSpec((tile_b, d_in), lambda i: (i, 0)),   # batch-tiled x
                param_spec(w1.shape), param_spec(b1.shape),
                param_spec(w2.shape), param_spec(b2.shape),
                param_spec(w3.shape), param_spec(b3.shape),
                param_spec(w4.shape), param_spec(b4.shape),
            ],
            out_specs=pl.BlockSpec((tile_b, d_out), lambda i: (i, 0)),
        ),
        # Batch tiles are independent -> shard across TCs on v7x once there is
        # more than one full-size tile of work; harmless (single step) on the
        # demo shape and on 1-TC chips.
        compiler_params=pltpu.CompilerParams(
            dimension_semantics=("parallel",)),
    )(x_bf, w1, b1, w2, b2, w3, b3, w4, b4)
    return out


def _reference(x, params):
    (w1, b1), (w2, b2), (w3, b3), (w4, b4) = params
    h = jnp.maximum(x @ w1 + b1, 0.0)
    h = jax.nn.sigmoid(h @ w2 + b2)
    h = jax.nn.sigmoid(h @ w3 + b3)
    return jax.nn.sigmoid(h @ w4 + b4)


def _init_params(key):
    dims = [INPUT_SIZE, HIDDEN1_SIZE, HIDDEN2_SIZE, HIDDEN3_SIZE, OUTPUT_SIZE]
    params = []
    for d_in, d_out in zip(dims[:-1], dims[1:]):
        key, kw, kb = jax.random.split(key, 3)
        # PyTorch nn.Linear default init: U(-1/sqrt(fan_in), 1/sqrt(fan_in))
        bound = 1.0 / jnp.sqrt(d_in)
        w = jax.random.uniform(kw, (d_in, d_out), jnp.float32, -bound, bound)
        b = jax.random.uniform(kb, (1, d_out), jnp.float32, -bound, bound)
        params.append((w, b))
    return tuple(params)


if __name__ == "__main__":
    key = jax.random.PRNGKey(0)
    kx, kp = jax.random.split(key)

    x = jax.random.normal(kx, (BATCH, INPUT_SIZE), jnp.float32)
    params = _init_params(kp)

    out = attribute_network3(x, params)
    out = jax.block_until_ready(out)

    ref = _reference(x, params)          # f32 reference path
    assert out.shape == ref.shape, (out.shape, ref.shape)
    # Tolerance relaxed vs. pure-f32: matmul operands are bf16 (f32 accum) and
    # the sigmoid uses an EUP approximate reciprocal.
    assert jnp.allclose(out, ref, atol=2e-2, rtol=2e-2), float(
        jnp.max(jnp.abs(out - ref)))
    assert bool(jnp.all((out >= 0.0) & (out <= 1.0)))  # final sigmoid range

    print("KERNEL_OK")
</pallas_src>

<mosaic_0001>
module attributes {stable_mosaic.version = 11 : i64} {
  func.func @attribute_net3_kernel(%arg0: i32, %arg1: memref<16x256xbf16, #tpu.memory_space<vmem>>, %arg2: memref<256x128xbf16, #tpu.memory_space<vmem>>, %arg3: memref<1x128xf32, #tpu.memory_space<vmem>>, %arg4: memref<128x128xbf16, #tpu.memory_space<vmem>>, %arg5: memref<1x128xf32, #tpu.memory_space<vmem>>, %arg6: memref<128x128xbf16, #tpu.memory_space<vmem>>, %arg7: memref<1x128xf32, #tpu.memory_space<vmem>>, %arg8: memref<128x128xbf16, #tpu.memory_space<vmem>>, %arg9: memref<1x128xf32, #tpu.memory_space<vmem>>, %arg10: memref<16x128xf32, #tpu.memory_space<vmem>>) attributes {dimension_semantics = [#tpu.dimension_semantics<parallel>], iteration_bounds = array<i64: 1>, scalar_prefetch = 0 : i64, scratch_operands = 0 : i64, tpu.core_type = #tpu.core_type<tc>, window_params = [{transform_indices = @transform_0, window_bounds = array<i64: 16, 256>}, {pipeline_mode = #tpu.pipeline_mode<synchronous>, transform_indices = @transform_1, window_bounds = array<i64: 256, 128>}, {pipeline_mode = #tpu.pipeline_mode<synchronous>, transform_indices = @transform_2, window_bounds = array<i64: 1, 128>}, {pipeline_mode = #tpu.pipeline_mode<synchronous>, transform_indices = @transform_3, window_bounds = array<i64: 128, 128>}, {pipeline_mode = #tpu.pipeline_mode<synchronous>, transform_indices = @transform_4, window_bounds = array<i64: 1, 128>}, {pipeline_mode = #tpu.pipeline_mode<synchronous>, transform_indices = @transform_5, window_bounds = array<i64: 128, 128>}, {pipeline_mode = #tpu.pipeline_mode<synchronous>, transform_indices = @transform_6, window_bounds = array<i64: 1, 128>}, {pipeline_mode = #tpu.pipeline_mode<synchronous>, transform_indices = @transform_7, window_bounds = array<i64: 128, 128>}, {pipeline_mode = #tpu.pipeline_mode<synchronous>, transform_indices = @transform_8, window_bounds = array<i64: 1, 128>}, {transform_indices = @transform_9, window_bounds = array<i64: 16, 128>}]} {
    %c0 = arith.constant 0 : index
    %c0_0 = arith.constant 0 : index
    %0 = vector.load %arg1[%c0, %c0_0] : memref<16x256xbf16, #tpu.memory_space<vmem>>, vector<16x256xbf16>
    %c0_1 = arith.constant 0 : index
    %c0_2 = arith.constant 0 : index
    %1 = vector.load %arg2[%c0_1, %c0_2] : memref<256x128xbf16, #tpu.memory_space<vmem>>, vector<256x128xbf16>
    %cst = arith.constant dense<0.000000e+00> : vector<16x128xf32>
    %2 = tpu.matmul %0, %1, %cst {dimension_numbers = #tpu.dot_dimension_numbers<[1], [0], [0], [1], [0, 0, 1, 1], [], []>} : vector<16x256xbf16>, vector<256x128xbf16>, vector<16x128xf32> -> vector<16x128xf32>
    %c0_3 = arith.constant 0 : index
    %c0_4 = arith.constant 0 : index
    %3 = vector.load %arg3[%c0_3, %c0_4] : memref<1x128xf32, #tpu.memory_space<vmem>>, vector<1x128xf32>
    %4 = vector.broadcast %3 : vector<1x128xf32> to vector<16x128xf32>
    %5 = arith.addf %2, %4 : vector<16x128xf32>
    %cst_5 = arith.constant 0.000000e+00 : f32
    %6 = vector.broadcast %cst_5 : f32 to vector<16x128xf32>
    %7 = arith.maximumf %5, %6 : vector<16x128xf32>
    %8 = arith.truncf %7 : vector<16x128xf32> to vector<16x128xbf16>
    %c0_6 = arith.constant 0 : index
    %c0_7 = arith.constant 0 : index
    %9 = vector.load %arg4[%c0_6, %c0_7] : memref<128x128xbf16, #tpu.memory_space<vmem>>, vector<128x128xbf16>
    %cst_8 = arith.constant dense<0.000000e+00> : vector<16x128xf32>
    %10 = tpu.matmul %8, %9, %cst_8 {dimension_numbers = #tpu.dot_dimension_numbers<[1], [0], [0], [1], [0, 0, 1, 1], [], []>} : vector<16x128xbf16>, vector<128x128xbf16>, vector<16x128xf32> -> vector<16x128xf32>
    %c0_9 = arith.constant 0 : index
    %c0_10 = arith.constant 0 : index
    %11 = vector.load %arg5[%c0_9, %c0_10] : memref<1x128xf32, #tpu.memory_space<vmem>>, vector<1x128xf32>
    %12 = vector.broadcast %11 : vector<1x128xf32> to vector<16x128xf32>
    %13 = arith.addf %10, %12 : vector<16x128xf32>
    %cst_11 = arith.constant 0.000000e+00 : f32
    %14 = vector.broadcast %cst_11 : f32 to vector<16x128xf32>
    %15 = arith.subf %14, %13 : vector<16x128xf32>
    %16 = math.exp %15 : vector<16x128xf32>
    %cst_12 = arith.constant 1.000000e+00 : f32
    %17 = vector.broadcast %cst_12 : f32 to vector<16x128xf32>
    %18 = arith.addf %17, %16 : vector<16x128xf32>
    %19 = tpu.reciprocal %18 {approx = true} : vector<16x128xf32> -> vector<16x128xf32>
    %20 = arith.truncf %19 : vector<16x128xf32> to vector<16x128xbf16>
    %c0_13 = arith.constant 0 : index
    %c0_14 = arith.constant 0 : index
    %21 = vector.load %arg6[%c0_13, %c0_14] : memref<128x128xbf16, #tpu.memory_space<vmem>>, vector<128x128xbf16>
    %cst_15 = arith.constant dense<0.000000e+00> : vector<16x128xf32>
    %22 = tpu.matmul %20, %21, %cst_15 {dimension_numbers = #tpu.dot_dimension_numbers<[1], [0], [0], [1], [0, 0, 1, 1], [], []>} : vector<16x128xbf16>, vector<128x128xbf16>, vector<16x128xf32> -> vector<16x128xf32>
    %c0_16 = arith.constant 0 : index
    %c0_17 = arith.constant 0 : index
    %23 = vector.load %arg7[%c0_16, %c0_17] : memref<1x128xf32, #tpu.memory_space<vmem>>, vector<1x128xf32>
    %24 = vector.broadcast %23 : vector<1x128xf32> to vector<16x128xf32>
    %25 = arith.addf %22, %24 : vector<16x128xf32>
    %cst_18 = arith.constant 0.000000e+00 : f32
    %26 = vector.broadcast %cst_18 : f32 to vector<16x128xf32>
    %27 = arith.subf %26, %25 : vector<16x128xf32>
    %28 = math.exp %27 : vector<16x128xf32>
    %cst_19 = arith.constant 1.000000e+00 : f32
    %29 = vector.broadcast %cst_19 : f32 to vector<16x128xf32>
    %30 = arith.addf %29, %28 : vector<16x128xf32>
    %31 = tpu.reciprocal %30 {approx = true} : vector<16x128xf32> -> vector<16x128xf32>
    %32 = arith.truncf %31 : vector<16x128xf32> to vector<16x128xbf16>
    %c0_20 = arith.constant 0 : index
    %c0_21 = arith.constant 0 : index
    %33 = vector.load %arg8[%c0_20, %c0_21] : memref<128x128xbf16, #tpu.memory_space<vmem>>, vector<128x128xbf16>
    %cst_22 = arith.constant dense<0.000000e+00> : vector<16x128xf32>
    %34 = tpu.matmul %32, %33, %cst_22 {dimension_numbers = #tpu.dot_dimension_numbers<[1], [0], [0], [1], [0, 0, 1, 1], [], []>} : vector<16x128xbf16>, vector<128x128xbf16>, vector<16x128xf32> -> vector<16x128xf32>
    %c0_23 = arith.constant 0 : index
    %c0_24 = arith.constant 0 : index
    %35 = vector.load %arg9[%c0_23, %c0_24] : memref<1x128xf32, #tpu.memory_space<vmem>>, vector<1x128xf32>
    %36 = vector.broadcast %35 : vector<1x128xf32> to vector<16x128xf32>
    %37 = arith.addf %34, %36 : vector<16x128xf32>
    %cst_25 = arith.constant 0.000000e+00 : f32
    %38 = vector.broadcast %cst_25 : f32 to vector<16x128xf32>
    %39 = arith.subf %38, %37 : vector<16x128xf32>
    %40 = math.exp %39 : vector<16x128xf32>
    %cst_26 = arith.constant 1.000000e+00 : f32
    %41 = vector.broadcast %cst_26 : f32 to vector<16x128xf32>
    %42 = arith.addf %41, %40 : vector<16x128xf32>
    %43 = tpu.reciprocal %42 {approx = true} : vector<16x128xf32> -> vector<16x128xf32>
    %c0_27 = arith.constant 0 : index
    %c0_28 = arith.constant 0 : index
    %44 = vector.load %arg10[%c0_27, %c0_28] : memref<16x128xf32, #tpu.memory_space<vmem>>, vector<16x128xf32>
    tpu.vector_store %arg10[%c0_27, %c0_28], %43 {strides = array<i32>} : memref<16x128xf32, #tpu.memory_space<vmem>>, vector<16x128xf32>,
    return
  }
  func.func @transform_0(%arg0: i32) -> (i32, i32) {
    %c0_i32 = arith.constant 0 : i32
    %c0_i32_0 = arith.constant 0 : i32
    return %arg0, %c0_i32 : i32, i32
  }
  func.func @transform_1(%arg0: i32) -> (i32, i32) {
    %c0_i32 = arith.constant 0 : i32
    %c0_i32_0 = arith.constant 0 : i32
    %c0_i32_1 = arith.constant 0 : i32
    return %c0_i32, %c0_i32_0 : i32, i32
  }
  func.func @transform_2(%arg0: i32) -> (i32, i32) {
    %c0_i32 = arith.constant 0 : i32
    %c0_i32_0 = arith.constant 0 : i32
    %c0_i32_1 = arith.constant 0 : i32
    return %c0_i32, %c0_i32_0 : i32, i32
  }
  func.func @transform_3(%arg0: i32) -> (i32, i32) {
    %c0_i32 = arith.constant 0 : i32
    %c0_i32_0 = arith.constant 0 : i32
    %c0_i32_1 = arith.constant 0 : i32
    return %c0_i32, %c0_i32_0 : i32, i32
  }
  func.func @transform_4(%arg0: i32) -> (i32, i32) {
    %c0_i32 = arith.constant 0 : i32
    %c0_i32_0 = arith.constant 0 : i32
    %c0_i32_1 = arith.constant 0 : i32
    return %c0_i32, %c0_i32_0 : i32, i32
  }
  func.func @transform_5(%arg0: i32) -> (i32, i32) {
    %c0_i32 = arith.constant 0 : i32
    %c0_i32_0 = arith.constant 0 : i32
    %c0_i32_1 = arith.constant 0 : i32
    return %c0_i32, %c0_i32_0 : i32, i32
  }
  func.func @transform_6(%arg0: i32) -> (i32, i32) {
    %c0_i32 = arith.constant 0 : i32
    %c0_i32_0 = arith.constant 0 : i32
    %c0_i32_1 = arith.constant 0 : i32
    return %c0_i32, %c0_i32_0 : i32, i32
  }
  func.func @transform_7(%arg0: i32) -> (i32, i32) {
    %c0_i32 = arith.constant 0 : i32
    %c0_i32_0 = arith.constant 0 : i32
    %c0_i32_1 = arith.constant 0 : i32
    return %c0_i32, %c0_i32_0 : i32, i32
  }
  func.func @transform_8(%arg0: i32) -> (i32, i32) {
    %c0_i32 = arith.constant 0 : i32
    %c0_i32_0 = arith.constant 0 : i32
    %c0_i32_1 = arith.constant 0 : i32
    return %c0_i32, %c0_i32_0 : i32, i32
  }
  func.func @transform_9(%arg0: i32) -> (i32, i32) {
    %c0_i32 = arith.constant 0 : i32
    %c0_i32_0 = arith.constant 0 : i32
    return %arg0, %c0_i32 : i32, i32
  }
}

</mosaic_0001>

<bundles_post_ra>
// kernel: tpu_custom_call.1
= control target key start
LH: loop header
LB: loop body
LE: loop exit
PB: predicated region body
PF: predicated region fallthrough
CT: control target
= control target key end

     0   :  { %14 = vsyncpa [#allocation3], 0  ;;  %s1095_s0 = inlined_call_operand.hbm [shape: bf16[16,256], index: 0, kind: input, shape index: {}]   ;;  %s1096_s1 = inlined_call_operand.hbm [shape: bf16[256,128], index: 1, kind: input, shape index: {}]   ;;  %s1097_s2 = inlined_call_operand.vmem [shape: f32[1,128], index: 2, kind: input, shape index: {}]   ;;  %s1098_s3 = inlined_call_operand.hbm [shape: bf16[128,128], index: 3, kind: input, shape index: {}]   ;;  %s1099_s4 = inlined_call_operand.vmem [shape: f32[1,128], index: 4, kind: input, shape index: {}]   ;;  %s1100_s5 = inlined_call_operand.hbm [shape: bf16[128,128], index: 5, kind: input, shape index: {}]   ;;  %s1101_s6 = inlined_call_operand.vmem [shape: f32[1,128], index: 6, kind: input, shape index: {}]   ;;  %s1102_s7 = inlined_call_operand.hbm [shape: bf16[128,128], index: 7, kind: input, shape index: {}]   ;;  %s1103_s8 = inlined_call_operand.vmem [shape: f32[1,128], index: 8, kind: input, shape index: {}]   ;;  %s1104_s9 = inlined_call_operand.hbm [shape: f32[16,128], index: 9, kind: output, shape index: {}]  }
   0x1   :  { %15 = vsyncpa [#allocation6], 0 }
   0x2   :  { %16 = vsyncpa [#allocation9], 0  ;;  %s35_s11 = sshll.u32 %s1096_s1, 4  ;;  %s36_s11 = int_to_ptr.hbm [resolvable:$true] %s35_s11 }
   0x3   :  { %17 = vsyncpa [#allocation4], 0  ;;  %s987_s12 = smov [#allocation5]   ;;  %s65_s16 = sshll.u32 %s1100_s5, 4  ;;  %s66_s16 = int_to_ptr.hbm [resolvable:$true] %s65_s16 }
   0x4   :  { %s37_s13 = sshll.u32 %s987_s12, 4  ;;  %s988_s17 = smov 64   ;;  %s38_s13 = int_to_ptr.vmem [resolvable:$true] %s37_s13 }
   0x5   :  { %s989_s18 = smov 4   ;;  %s990_s19 = smov [#allocation8]  }
   0x6   :  { %43 = dma.hbm_to_vmem [thread:$0]  %s36_s11, 2048, %s38_s13, [#allocation6], %s988_s17, %s988_s17, %s989_s18  }
   0x7   :  { %s67_s20 = sshll.u32 %s990_s19, 4  ;;  %s22_s22 = sshll.u32 %s1095_s0, 4  ;;  %s68_s20 = int_to_ptr.vmem [resolvable:$true] %s67_s20  ;;  %s23_s22 = int_to_ptr.hbm [resolvable:$true] %s22_s22 }
   0x8   :  { %73 = dma.hbm_to_vmem [thread:$0]  %s66_s16, 1024, %s68_s20, [#allocation9], %s988_s17, %s988_s17, %s989_s18  }
   0x9   :  { %s991_s5 = smov [#allocation2]   ;;  %s50_s26 = sshll.u32 %s1098_s3, 4  ;;  %s51_s26 = int_to_ptr.hbm [resolvable:$true] %s50_s26 }
   0xa   :  { %s24_s23 = sshll.u32 %s991_s5, 4  ;;  %s992_s27 = smov 128   ;;  %s25_s23 = int_to_ptr.vmem [resolvable:$true] %s24_s23 }
   0xb   :  { %s993_s28 = smov 8   ;;  %s994_s0 = smov [#allocation7]  }
   0xc   :  { %30 = dma.hbm_to_vmem [thread:$0]  %s23_s22, 256, %s25_s23, [#allocation3], %s992_s27, %s992_s27, %s993_s28  }
   0xd   :  { %s52_s29 = sshll.u32 %s994_s0, 4  ;;  %s80_s11 = sshll.u32 %s1102_s7, 4  ;;  %s53_s29 = int_to_ptr.vmem [resolvable:$true] %s52_s29  ;;  %s81_s11 = int_to_ptr.hbm [resolvable:$true] %s80_s11 }
   0xe   :  { %58 = dma.hbm_to_vmem [thread:$0]  %s51_s26, 1024, %s53_s29, [#allocation6], %s988_s17, %s988_s17, %s989_s18  }
   0xf   :  { %s995_s3 = smov [#allocation10]  }
  0x10   :  { %s82_s12 = sshll.u32 %s995_s3, 4  ;;  %s83_s12 = int_to_ptr.vmem [resolvable:$true] %s82_s12 }
  0x11   :  { %88 = dma.hbm_to_vmem [thread:$0]  %s81_s11, 1024, %s83_s12, [#allocation9], %s988_s17, %s988_s17, %s989_s18  }
  0x12   :  { %979 = dma.done.wait [#allocation3], 256  }
  0x13   :  { %980 = vsyncadd [#allocation3], 4294967040 }
  0x14   :  { %981 = dma.done.wait [#allocation6], 3072  }
  0x15   :  { %982 = vsyncadd [#allocation6], 4294964224 }
  0x16   :  { %983 = dma.done.wait [#allocation9], 2048  }
  0x17   :  { %984 = vsyncadd [#allocation9], 4294965248  ;;  %v764_v0 = vld [vmem:[#allocation5 + $0x38] sm:$0xff]  ;;  %v763_v2 = vld [vmem:[#allocation5 + $0x30] sm:$0xff]  ;;  %s996_s17 = smov [#allocation11]   ;;  %s572_s20 = sshll.u32 %s1104_s9, 4  ;;  %s573_s20 = int_to_ptr.hbm [resolvable:$true] %s572_s20 }
  0x18   :  { %v772_v1 = vld [vmem:[#allocation5 + $0x78] sm:$0xff]  ;;  %255 = vmatpush.bf16.msra.mxu0 %v764_v0  ;;  %v771_v3 = vld [vmem:[#allocation5 + $0x70] sm:$0xff]  ;;  %v762_v4 = vld [vmem:[#allocation5 + $0x28] sm:$0xff] }
  0x19   :  { %269 = vmatpush.bf16.msra.mxu1 %v772_v1  ;;  %v770_v5 = vld [vmem:[#allocation5 + $0x68] sm:$0xff]  ;;  %v780_v6 = vld [vmem:[#allocation7 + $0x38] sm:$0xff]  ;;  %v779_v7 = vld [vmem:[#allocation7 + $0x30] sm:$0xff] }
  0x1a   :  { %354 = vmatpush.bf16.msra.mxu2 %v780_v6  ;;  %v761_v8 = vld [vmem:[#allocation5 + $0x20] sm:$0xff]  ;;  %v778_v10 = vld [vmem:[#allocation7 + $0x28] sm:$0xff]  ;;  %v760_v11 = vld [vmem:[#allocation5 + $0x18] sm:$0xff] }
  0x1b   :  { %v769_v9 = vld [vmem:[#allocation5 + $0x60] sm:$0xff]  ;;  %v768_v12 = vld [vmem:[#allocation5 + $0x58] sm:$0xff]  ;;  %v759_v14 = vld [vmem:[#allocation5 + $0x10] sm:$0xff] }
  0x1c   :  { %256 = vmatpush.bf16.msra.mxu0 %v763_v2  ;;  %v777_v13 = vld [vmem:[#allocation7 + $0x20] sm:$0xff]  ;;  %v767_v15 = vld [vmem:[#allocation5 + $0x50] sm:$0xff]  ;;  %v758_v16 = vld [vmem:[#allocation5 + $0x8] sm:$0xff] }
  0x1d   :  { %270 = vmatpush.bf16.msra.mxu1 %v771_v3  ;;  %v766_v17 = vld [vmem:[#allocation5 + $0x48] sm:$0xff]  ;;  %v757_v18 = vld [vmem:[#allocation5] sm:$0xff]  ;;  %v589_v20 = vld [vmem:[#allocation2] sm:$0xf] }
  0x1e   :  { %355 = vmatpush.bf16.msra.mxu2 %v779_v7  ;;  %v765_v19 = vld [vmem:[#allocation5 + $0x40] sm:$0xff]  ;;  %v756_v21 = vld [vmem:[#allocation2 + $0x4] sm:$0xf0]  ;;  %v755_v22 = vld [vmem:[#allocation2 + $0x4] sm:$0xf] }
  0x1f   :  { %v591_v23 = vld [vmem:[#allocation2 + $0x8] sm:$0xf0]  ;;  %v590_v24 = vor.u32 %v756_v21, %v589_v20  ;;  %v775_v27 = vld [vmem:[#allocation7 + $0x10] sm:$0xff]  ;;  %v774_v28 = vld [vmem:[#allocation7 + $0x8] sm:$0xff] }
  0x20   :  { %257 = vmatpush.bf16.msra.mxu0 %v762_v4  ;;  %v594_v25 = vor.u32 %v755_v22, %v591_v23  ;;  %v776_v26 = vld [vmem:[#allocation7 + $0x18] sm:$0xff]  ;;  %v773_v29 = vld [vmem:[#allocation7] sm:$0xff]  ;;  %v807_v32 = vld [vmem:[%s1097_s2] ss:$0 sm:$0xff] }
  0x21   :  { %271 = vmatpush.bf16.msra.mxu1 %v770_v5  ;;  %v788_v42 = vld [vmem:[#allocation8 + $0x38] sm:$0xff]  ;;  %v787_v43 = vld [vmem:[#allocation8 + $0x30] sm:$0xff]  ;;  %v786_v44 = vld [vmem:[#allocation8 + $0x28] sm:$0xff] }
  0x22   :  { %356 = vmatpush.bf16.msra.mxu2 %v778_v10  ;;  %447 = vmatpush.bf16.msra.mxu3 %v788_v42  ;;  %v785_v45 = vld [vmem:[#allocation8 + $0x20] sm:$0xff]  ;;  %v784_v46 = vld [vmem:[#allocation8 + $0x18] sm:$0xff]  ;;  %v783_v47 = vld [vmem:[#allocation8 + $0x10] sm:$0xff] }
  0x23   :  { %v782_v48 = vld [vmem:[#allocation8 + $0x8] sm:$0xff]  ;;  %v781_v49 = vld [vmem:[#allocation8] sm:$0xff]  ;;  %v808_v50 = vld [vmem:[%s1099_s4] ss:$0 sm:$0xff] }
  0x24   :  { %258 = vmatpush.bf16.msra.mxu0 %v761_v8  ;;  %v796_v2 = vld [vmem:[#allocation10 + $0x38] sm:$0xff]  ;;  %v795_v3 = vld [vmem:[#allocation10 + $0x30] sm:$0xff]  ;;  %v794_v4 = vld [vmem:[#allocation10 + $0x28] sm:$0xff] }
  0x25   :  { %272 = vmatpush.bf16.msra.mxu1 %v769_v9  ;;  %v793_v5 = vld [vmem:[#allocation10 + $0x20] sm:$0xff]  ;;  %v792_v6 = vld [vmem:[#allocation10 + $0x18] sm:$0xff]  ;;  %v791_v7 = vld [vmem:[#allocation10 + $0x10] sm:$0xff] }
  0x26   :  { %357 = vmatpush.bf16.msra.mxu2 %v777_v13  ;;  %448 = vmatpush.bf16.msra.mxu3 %v787_v43  ;;  %v790_v8 = vld [vmem:[#allocation10 + $0x8] sm:$0xff]  ;;  %v789_v9 = vld [vmem:[#allocation10] sm:$0xff]  ;;  %v809_v10 = vld [vmem:[%s1101_s6] ss:$0 sm:$0xff] }
  0x28   :  { %259 = vmatpush.bf16.msra.mxu0 %v760_v11 }
  0x29   :  { %273 = vmatpush.bf16.msra.mxu1 %v768_v12 }
  0x2a   :  { %358 = vmatpush.bf16.msra.mxu2 %v776_v26  ;;  %449 = vmatpush.bf16.msra.mxu3 %v786_v44  ;;  %v810_v26 = vld [vmem:[%s1103_s8] ss:$0 sm:$0xff]  ;;  %s570_s8 = sshll.u32 %s996_s17, 4  ;;  %s571_s8 = int_to_ptr.vmem [resolvable:$true] %s570_s8 }
  0x2c   :  { %260 = vmatpush.bf16.msra.mxu0 %v759_v14 }
  0x2d   :  { %274 = vmatpush.bf16.msra.mxu1 %v767_v15 }
  0x2e   :  { %359 = vmatpush.bf16.msra.mxu2 %v775_v27  ;;  %450 = vmatpush.bf16.msra.mxu3 %v785_v45 }
  0x30   :  { %261 = vmatpush.bf16.msra.mxu0 %v758_v16 }
  0x31   :  { %275 = vmatpush.bf16.msra.mxu1 %v766_v17 }
  0x32   :  { %360 = vmatpush.bf16.msra.mxu2 %v774_v28  ;;  %451 = vmatpush.bf16.msra.mxu3 %v784_v46 }
  0x34   :  { %262 = vmatpush.bf16.msra.mxu0 %v757_v18 }
  0x35   :  { %276 = vmatpush.bf16.msra.mxu1 %v765_v19 }
  0x36   :  { %361 = vmatpush.bf16.msra.mxu2 %v773_v29  ;;  %452 = vmatpush.bf16.msra.mxu3 %v783_v47 }
  0x37   :  { %263 = vmatmul.bf16.vlgmr.msra.gmra.mxu0 %v590_v24 }
  0x38   :  { %277 = vmatmul.bf16.vlgmr.msra.gmra.mxu1 %v594_v25  ;;  %540 = vmatpush.bf16.msrb.mxu0 %v796_v2 }
  0x3a   :  { %453 = vmatpush.bf16.msra.mxu3 %v782_v48 }
  0x3c   :  { %541 = vmatpush.bf16.msrb.mxu0 %v795_v3 }
  0x3e   :  { %454 = vmatpush.bf16.msra.mxu3 %v781_v49 }
  0x40   :  { %542 = vmatpush.bf16.msrb.mxu0 %v794_v4 }
  0x44   :  { %543 = vmatpush.bf16.msrb.mxu0 %v793_v5 }
  0x48   :  { %544 = vmatpush.bf16.msrb.mxu0 %v792_v6 }
  0x4c   :  { %545 = vmatpush.bf16.msrb.mxu0 %v791_v7 }
  0x50   :  { %546 = vmatpush.bf16.msrb.mxu0 %v790_v8 }
  0x54   :  { %547 = vmatpush.bf16.msrb.mxu0 %v789_v9 }
  0xb4   :  { %v264_v30 = vpop.f32.mrf.mxu0 }
  0xb5   :  { %v278_v31 = vpop.f32.mrf.mxu1  ;;  %v265_v33 = vadd.f32 %v807_v32, %v264_v30 }
  0xb7   :  { %v279_v35 = vadd.f32 %v278_v31, %v265_v33 }
  0xb9   :  { %v283_v39 = vmax.f32 %v279_v35, 0.0 }
  0xbc   :  { %v266_v34 = vpop.f32.mrf.mxu0 }
  0xbd   :  { %v267_v36 = vadd.f32 %v807_v32, %v266_v34  ;;  %v280_v37 = vpop.f32.mrf.mxu1 }
  0xbf   :  { %v281_v38 = vadd.f32 %v280_v37, %v267_v36 }
  0xc1   :  { %v284_v40 = vmax.f32 %v281_v38, 0.0 }
  0xc3   :  { %v285_v41 = vpack.c.bf16 %v284_v40, %v283_v39 }
  0xc5   :  { %362 = vmatmul.bf16.vlgmr.msra.gmra.mxu2 %v285_v41 }
 0x148   :  { %v363_v51 = vpop.f32.mrf.mxu2 }
 0x149   :  { %v364_v52 = vadd.f32 %v808_v50, %v363_v51 }
 0x14b   :  { %v368_v53 = vsub.f32 0.0, %v364_v52 }
 0x14d   :  { %v370_v54 = vmul.f32 1.442695, %v368_v53 }
 0x14f   :  { %811 = vpow2.f32 %v370_v54 }
 0x150   :  { %v365_v55 = vpop.f32.mrf.mxu2 }
 0x151   :  { %v366_v56 = vadd.f32 %v808_v50, %v365_v55 }
 0x153   :  { %v369_v57 = vsub.f32 0.0, %v366_v56 }
 0x155   :  { %v372_v58 = vmul.f32 1.442695, %v369_v57  ;;  %v812_v59 = vpop.eup %811 }
 0x156   :  { %v374_v60 = vadd.f32 1.0, %v812_v59 }
 0x157   :  { %813 = vpow2.f32 %v372_v58 }
 0x158   :  { %815 = vrcp.f32 %v374_v60 }
 0x15d   :  { %v814_v61 = vpop.eup %813 }
 0x15e   :  { %v375_v62 = vadd.f32 1.0, %v814_v61  ;;  %v816_v63 = vpop.eup %815 }
 0x160   :  { %817 = vrcp.f32 %v375_v62 }
 0x166   :  { %v818_v0 = vpop.eup %817 }
 0x167   :  { %v378_v1 = vpack.c.bf16 %v818_v0, %v816_v63 }
 0x169   :  { %455 = vmatmul.bf16.vlgmr.msra.gmra.mxu3 %v378_v1 }
 0x1ec   :  { %v456_v11 = vpop.f32.mrf.mxu3 }
 0x1ed   :  { %v457_v12 = vadd.f32 %v809_v10, %v456_v11 }
 0x1ef   :  { %v461_v13 = vsub.f32 0.0, %v457_v12 }
 0x1f1   :  { %v463_v14 = vmul.f32 1.442695, %v461_v13 }
 0x1f3   :  { %819 = vpow2.f32 %v463_v14 }
 0x1f4   :  { %v458_v15 = vpop.f32.mrf.mxu3 }
 0x1f5   :  { %v459_v16 = vadd.f32 %v809_v10, %v458_v15 }
 0x1f7   :  { %v462_v17 = vsub.f32 0.0, %v459_v16 }
 0x1f9   :  { %v465_v18 = vmul.f32 1.442695, %v462_v17  ;;  %v820_v19 = vpop.eup %819 }
 0x1fa   :  { %v467_v20 = vadd.f32 1.0, %v820_v19 }
 0x1fb   :  { %821 = vpow2.f32 %v465_v18 }
 0x1fc   :  { %823 = vrcp.f32 %v467_v20 }
 0x201   :  { %v822_v21 = vpop.eup %821 }
 0x202   :  { %v468_v22 = vadd.f32 1.0, %v822_v21  ;;  %v824_v23 = vpop.eup %823 }
 0x204   :  { %825 = vrcp.f32 %v468_v22 }
 0x20a   :  { %v826_v24 = vpop.eup %825 }
 0x20b   :  { %v471_v25 = vpack.c.bf16 %v826_v24, %v824_v23 }
 0x20d   :  { %548 = vmatmul.bf16.vlgmr.msrb.gmra.mxu0 %v471_v25 }
 0x28a   :  { %v549_v27 = vpop.f32.mrf.mxu0 }
 0x28b   :  { %v550_v28 = vadd.f32 %v810_v26, %v549_v27 }
 0x28d   :  { %v554_v29 = vsub.f32 0.0, %v550_v28 }
 0x28f   :  { %v556_v30 = vmul.f32 1.442695, %v554_v29 }
 0x291   :  { %827 = vpow2.f32 %v556_v30 }
 0x292   :  { %v551_v31 = vpop.f32.mrf.mxu0 }
 0x293   :  { %v552_v32 = vadd.f32 %v810_v26, %v551_v31 }
 0x295   :  { %v555_v33 = vsub.f32 0.0, %v552_v32 }
 0x297   :  { %v828_v34 = vpop.eup %827  ;;  %v558_v35 = vmul.f32 1.442695, %v555_v33 }
 0x298   :  { %v560_v36 = vadd.f32 1.0, %v828_v34 }
 0x299   :  { %829 = vpow2.f32 %v558_v35 }
 0x29a   :  { %831 = vrcp.f32 %v560_v36 }
 0x29f   :  { %v830_v37 = vpop.eup %829 }
 0x2a0   :  { %v832_v38 = vpop.eup %831  ;;  %v561_v39 = vadd.f32 1.0, %v830_v37 }
 0x2a1   :  { %564 = vst [vmem:[#allocation11] sm:$0xff] %v832_v38 }
 0x2a2   :  { %833 = vrcp.f32 %v561_v39 }
 0x2a8   :  { %v834_v40 = vpop.eup %833 }
 0x2a9   :  { %565 = vst [vmem:[#allocation11 + $0x8] sm:$0xff] %v834_v40 }
 0x2aa   :  { %578 = dma.vmem_to_hbm [thread:$0]  %s571_s8, 256, %s573_s20, [#allocation4], %s992_s27, %s992_s27, %s993_s28  }
 0x2ab   :  { %985 = dma.done.wait [#allocation4], 256  }
 0x2ac   :  { %986 = vsyncadd [#allocation4], 4294967040 }
 0x2ad   :  { %583 = vsyncpa [#allocation3], 1 }
 0x2ae   :  { %584 = vsyncpa [#allocation6], 1 }
 0x2af   :  { %585 = vsyncpa [#allocation9], 1 }
 0x2b0   :  { %586 = vsyncpa [#allocation4], 1 }

</bundles_post_ra>
